<compile_context>
chip_gen: v7x
topology: tpu7x:2x2x1
jax: 0.10.0
libtpu: 0.0.40
codegen_flags: <defaults>
</compile_context>

<pallas_src>
import functools

import jax
import jax.numpy as jnp
from jax.experimental import pallas as pl
from jax.experimental.pallas import tpu as pltpu

_HIGHEST = jax.lax.Precision.HIGHEST


def _round_up(x, m):
    return ((x + m - 1) // m) * m


# ----------------------------------------------------------------------------
# Kernel bodies
# ----------------------------------------------------------------------------
def _cosine_sim(q, knT):
    """sim = (q @ knT) * rsqrt(sum q^2): TB*P_pad scalings, rsqrt on the EUP slot."""
    sim_raw = jnp.dot(q, knT, preferred_element_type=jnp.float32,
                      precision=_HIGHEST)                     # (TB, P_pad)
    q_ss = jnp.sum(q * q, axis=-1, keepdims=True)             # (TB, 1)
    inv_qn = jax.lax.rsqrt(jnp.maximum(q_ss, 1e-24))          # == 1/max(||q||,1e-12)
    return sim_raw * inv_qn


def _dual_prompt_select_kernel(q_ref, knT_ref, p2_ref, sim_ref, pflat_ref, *, pool):
    """Fused cosine-sim + top-1 argmax + one-hot-matmul gather for TB query rows.

    q_ref:     (TB, Dk)       raw (un-normalized) queries, f32
    knT_ref:   (Dk, P_pad)    pre-transposed L2-normalized keys (cols >= pool zero)
    p2_ref:    (P_pad, LpD)   flattened prompt pool (rows >= pool zero)
    sim_ref:   (TB, P_pad)    cosine similarity (cols >= pool are don't-care)
    pflat_ref: (TB, LpD)      gathered top-1 prompt per query row
    """
    q = q_ref[...].astype(jnp.float32)
    sim = _cosine_sim(q, knT_ref[...])
    sim_ref[...] = sim                                         # lane-dense store

    # Top-1 over the *real* pool columns, first-max tie-break (like torch.topk k=1).
    col = jax.lax.broadcasted_iota(jnp.int32, sim.shape, 1)
    sim_m = jnp.where(col < pool, sim, -jnp.inf)
    mx = jnp.max(sim_m, axis=-1, keepdims=True)
    # Sentinel pool-1 keeps the index in range even for an all-NaN row.
    idx = jnp.min(jnp.where(sim_m >= mx, col, pool - 1),
                  axis=-1, keepdims=True)                      # (TB, 1) int32

    # Gather as a one-hot MXU matmul (HIGHEST precision -> exact copy of the f32
    # prompt rows; onehot entries 0/1 are exactly representable).
    onehot = (col == idx).astype(jnp.float32)                  # (TB, P_pad)
    pflat = jnp.dot(onehot, p2_ref[...], preferred_element_type=jnp.float32,
                    precision=_HIGHEST)
    pflat_ref[...] = pflat.astype(pflat_ref.dtype)


def _dual_prompt_sim_kernel(q_ref, knT_ref, sim_ref):
    """Sim-only variant for the bootstrap-training path (no prompt gather/write)."""
    sim_ref[...] = _cosine_sim(q_ref[...].astype(jnp.float32), knT_ref[...])


# ----------------------------------------------------------------------------
# Wrapper around pallas_call
# ----------------------------------------------------------------------------
def dual_prompt_e_select(x_querry, knT_pad, p2_pad, pool, *, gather=True,
                         max_rows_per_tile=256):
    """Fused e-prompt selection for one layer.

    x_querry: (B, Dk)       raw queries.
    knT_pad:  (Dk, P_pad)   pre-normalized, pre-transposed keys (P_pad % 128 == 0).
    p2_pad:   (P_pad, LpD)  flattened prompt pool, zero-padded rows.
    Returns (cos_sim (B, pool) f32, P_flat (B, LpD) or None when gather=False).
    """
    B, Dk = x_querry.shape
    Dk2, P_pad = knT_pad.shape
    assert Dk == Dk2
    LpD = p2_pad.shape[1]

    # Batch-aware tiling: pad to a sublane multiple, then split into >=2 tiles so
    # the "parallel" grid axis can shard across v7x's 2 TensorCores; tiles capped
    # at max_rows_per_tile rows to bound VMEM (raise toward 512 on v5e/v6e).
    B8 = _round_up(max(B, 1), 8)
    n_tiles = 1 if B8 <= 8 else max(2, pl.cdiv(B8, max_rows_per_tile))
    TB = _round_up(pl.cdiv(B8, n_tiles), 8)
    B_pad = TB * n_tiles

    q = x_querry.astype(jnp.float32)
    if B_pad != B:
        q = jnp.pad(q, ((0, B_pad - B), (0, 0)))

    # Per-tile double-buffered VMEM footprint; raise the scoped limit only if the
    # default (~32 MiB) would be exceeded.
    # TODO(synk): grid-invariant knT/p2 blocks could use pipeline_mode=pl.Buffered(1)
    # to halve their VMEM on v7x; kept default-buffered here for portability.
    f32b = 4
    vmem_bytes = 2 * TB * Dk * f32b + 2 * Dk * P_pad * f32b + 2 * TB * P_pad * f32b
    if gather:
        vmem_bytes += 2 * P_pad * LpD * f32b + 2 * TB * LpD * f32b
    cp_kwargs = dict(dimension_semantics=("parallel",))
    if vmem_bytes > (28 << 20):
        cp_kwargs["vmem_limit_bytes"] = int(min(vmem_bytes + (8 << 20), 100 << 20))
    compiler_params = pltpu.CompilerParams(**cp_kwargs)

    q_spec = pl.BlockSpec((TB, Dk), lambda i: (i, 0))
    knT_spec = pl.BlockSpec((Dk, P_pad), lambda i: (0, 0))
    sim_spec = pl.BlockSpec((TB, P_pad), lambda i: (i, 0))

    if gather:
        sim, pflat = pl.pallas_call(
            functools.partial(_dual_prompt_select_kernel, pool=pool),
            out_shape=(
                jax.ShapeDtypeStruct((B_pad, P_pad), jnp.float32),
                jax.ShapeDtypeStruct((B_pad, LpD), p2_pad.dtype),
            ),
            grid=(n_tiles,),
            in_specs=[q_spec, knT_spec,
                      pl.BlockSpec((P_pad, LpD), lambda i: (0, 0))],
            out_specs=(sim_spec, pl.BlockSpec((TB, LpD), lambda i: (i, 0))),
            compiler_params=compiler_params,
        )(q, knT_pad, p2_pad)
        return sim[:B, :pool], pflat[:B]
    else:
        sim = pl.pallas_call(
            _dual_prompt_sim_kernel,
            out_shape=jax.ShapeDtypeStruct((B_pad, P_pad), jnp.float32),
            grid=(n_tiles,),
            in_specs=[q_spec, knT_spec],
            out_specs=sim_spec,
            compiler_params=compiler_params,
        )(q, knT_pad)
        return sim[:B, :pool], None


# ----------------------------------------------------------------------------
# DualPrompt module (JAX wrapper around the fused Pallas kernels)
# ----------------------------------------------------------------------------
class DualPromptPallas:
    def __init__(self, emb_d, n_tasks, e_prompt_pool, e_prompt_length,
                 g_prompt_length, prompt_mode='prompt-tune', key_dim=768, seed=0):
        assert prompt_mode == 'prompt-tune'
        self.task_count = 0
        self.emb_d = emb_d
        self.key_d = key_dim
        self.n_tasks = n_tasks
        self.top_k = 1
        self.task_id_bootstrap = True
        self.g_layers = [0, 1]
        self.e_layers = [2, 3, 4]
        self.g_p_length = g_prompt_length
        self.e_p_length = e_prompt_length
        self.e_pool_size = e_prompt_pool

        # Deterministic parameter init (matches tensor_prompt's uniform_ -> U(0,1)).
        key = jax.random.PRNGKey(seed)
        self.params = {}
        for g in self.g_layers:
            key, sub = jax.random.split(key)
            self.params[f'g_p_{g}'] = jax.random.uniform(
                sub, (self.g_p_length, emb_d), dtype=jnp.float32)
        for e in self.e_layers:
            key, sub_p, sub_k = jax.random.split(key, 3)
            self.params[f'e_p_{e}'] = jax.random.uniform(
                sub_p, (self.e_pool_size, self.e_p_length, emb_d), dtype=jnp.float32)
            self.params[f'e_k_{e}'] = jax.random.uniform(
                sub_k, (self.e_pool_size, self.key_d), dtype=jnp.float32)

        self._refresh_derived()

    def _refresh_derived(self):
        """Hoisted per-layer constants for the fused kernel.

        Once per parameter update (NOT per forward): keys are L2-normalized,
        zero-padded to a 128-multiple pool width and TRANSPOSED to (Dk, P_pad);
        prompt pools are flattened and zero-padded to (P_pad, Lp*emb_d) so the
        in-kernel gather is a single lane-dense one-hot matmul.
        """
        self._p_pad = _round_up(self.e_pool_size, 128)
        pad_rows = self._p_pad - self.e_pool_size
        LpD = self.e_p_length * self.emb_d
        self.derived = {}
        for e in self.e_layers:
            K = self.params[f'e_k_{e}']
            p = self.params[f'e_p_{e}']
            kn = K / jnp.maximum(jnp.linalg.norm(K, axis=1, keepdims=True), 1e-12)
            kn_pad = jnp.pad(kn, ((0, pad_rows), (0, 0)))
            self.derived[f'e_knT_{e}'] = jnp.asarray(kn_pad.T)          # (Dk, P_pad)
            p2 = p.reshape(self.e_pool_size, LpD)
            self.derived[f'e_p2_{e}'] = jnp.pad(p2, ((0, pad_rows), (0, 0)))

    def process_task_count(self):
        self.task_count += 1

    def forward(self, x_querry, l, x_block, train=False, task_id=None):
        B, _ = x_querry.shape
        loss = 0
        e_valid = False
        if l in self.e_layers:
            e_valid = True
            p = self.params[f'e_p_{l}']
            i = self.e_p_length // 2
            knT = self.derived[f'e_knT_{l}']
            p2 = self.derived[f'e_p2_{l}']
            if train and self.task_id_bootstrap:
                # Gather is skipped entirely: P_ is p[task_id], so only cosine
                # similarity is needed (sim-only kernel, no pflat HBM stream).
                cos_sim, _ = dual_prompt_e_select(
                    x_querry, knT, p2, self.e_pool_size, gather=False)
                loss = jnp.sum(1.0 - cos_sim[:, task_id])
                P_ = jnp.broadcast_to(p[task_id], (B, self.e_p_length, self.emb_d))
            else:
                cos_sim, P_flat = dual_prompt_e_select(
                    x_querry, knT, p2, self.e_pool_size, gather=True)
                if train:
                    # TODO(synk): mirrors the PyTorch `cos_sim[:, k_idx]` quirk — a
                    # (B, B) cross term with top_k=1 — kept for spec parity.
                    k_idx = jnp.argmax(cos_sim, axis=1)
                    loss = jnp.sum(1.0 - jnp.take(cos_sim, k_idx, axis=1))
                P_ = P_flat.reshape(B, self.e_p_length, self.emb_d)
            Ek = P_[:, :i, :].reshape((B, -1, self.emb_d))
            Ev = P_[:, i:, :].reshape((B, -1, self.emb_d))

        g_valid = False
        if l in self.g_layers:
            g_valid = True
            j = self.g_p_length // 2
            gp = self.params[f'g_p_{l}']
            P_g = jnp.broadcast_to(gp, (B, self.g_p_length, self.emb_d))
            Gk = P_g[:, :j, :]
            Gv = P_g[:, j:, :]

        if e_valid and g_valid:
            Pk = jnp.concatenate((Ek, Gk), axis=1)
            Pv = jnp.concatenate((Ev, Gv), axis=1)
            p_return = [Pk, Pv]
        elif e_valid:
            p_return = [Ek, Ev]
        elif g_valid:
            p_return = [Gk, Gv]
            loss = 0
        else:
            p_return = None
            loss = 0

        if train:
            return p_return, loss, x_block
        else:
            return p_return, 0, x_block


# ----------------------------------------------------------------------------
# Demo / sanity check
# ----------------------------------------------------------------------------
if __name__ == "__main__":
    emb_d = 32
    key_dim = 32
    n_tasks = 4
    e_prompt_pool = 6
    e_prompt_length = 8
    g_prompt_length = 6
    B, seq = 2, 8

    model = DualPromptPallas(emb_d, n_tasks, e_prompt_pool, e_prompt_length,
                             g_prompt_length, key_dim=key_dim, seed=0)

    key = jax.random.PRNGKey(0)
    kq, kb = jax.random.split(key)
    x_querry = jax.random.normal(kq, (B, key_dim), dtype=jnp.float32)
    x_block = jax.random.normal(kb, (B, seq, emb_d), dtype=jnp.float32)

    # --- e-layer, inference path (single fused kernel with one-hot-matmul gather) ---
    (Ek, Ev), loss_e, xb = model.forward(x_querry, l=2, x_block=x_block, train=False)
    Ek, Ev = jax.block_until_ready((Ek, Ev))
    assert Ek.shape == (B, e_prompt_length // 2, emb_d)
    assert Ev.shape == (B, e_prompt_length // 2, emb_d)

    # Reference cosine similarity in plain JAX.
    K = model.params['e_k_2']
    p = model.params['e_p_2']
    qn = x_querry / jnp.maximum(
        jnp.linalg.norm(x_querry, axis=1, keepdims=True), 1e-12)
    kn = K / jnp.maximum(jnp.linalg.norm(K, axis=1, keepdims=True), 1e-12)
    sim_ref = qn @ kn.T

    cos_sim_k, P_flat_k = dual_prompt_e_select(
        x_querry, model.derived['e_knT_2'], model.derived['e_p2_2'], e_prompt_pool)
    cos_sim_k, P_flat_k = jax.block_until_ready((cos_sim_k, P_flat_k))
    assert cos_sim_k.shape == (B, e_prompt_pool)
    # HIGHEST-precision sim matmul + EUP rsqrt vs XLA reference.
    assert jnp.allclose(cos_sim_k, sim_ref, atol=1e-4, rtol=1e-4), "cos_sim mismatch"

    # The one-hot-matmul gather (Precision.HIGHEST) must copy the prompt selected by
    # the kernel's own argmax (same first-max tie-break as torch.topk k=1).
    idx_k = jnp.argmax(cos_sim_k, axis=1)
    P_sel = p[idx_k]
    i = e_prompt_length // 2
    assert jnp.allclose(Ek, P_sel[:, :i, :], atol=1e-6), "gather (Ek) mismatch"
    assert jnp.allclose(Ev, P_sel[:, i:, :], atol=1e-6), "gather (Ev) mismatch"

    # --- g-layer, inference path ---
    (Gk, Gv), loss_g, _ = model.forward(x_querry, l=0, x_block=x_block, train=False)
    Gk, Gv = jax.block_until_ready((Gk, Gv))
    assert Gk.shape == (B, g_prompt_length // 2, emb_d)
    assert Gv.shape == (B, g_prompt_length // 2, emb_d)

    # --- e-layer, training path with task-id bootstrap (sim-only kernel, no gather) ---
    task_id = 1
    (Ek_t, Ev_t), loss_t, _ = model.forward(
        x_querry, l=3, x_block=x_block, train=True, task_id=task_id)
    Ek_t, Ev_t, loss_t = jax.block_until_ready((Ek_t, Ev_t, loss_t))
    assert jnp.isfinite(loss_t)
    p3 = model.params['e_p_3']
    assert jnp.allclose(Ek_t, jnp.broadcast_to(p3[task_id][:i], Ek_t.shape)), \
        "bootstrap Ek mismatch"

    # --- e-layer, non-bootstrap training path (kernel gather + quirky loss) ---
    model.task_id_bootstrap = False
    (Ek_n, Ev_n), loss_n, _ = model.forward(
        x_querry, l=4, x_block=x_block, train=True, task_id=None)
    loss_n = jax.block_until_ready(loss_n)
    assert jnp.isfinite(loss_n)
    assert Ek_n.shape == (B, e_prompt_length // 2, emb_d)
    model.task_id_bootstrap = True

    print("KERNEL_OK")
</pallas_src>

<mosaic_0001>
module attributes {stable_mosaic.version = 11 : i64} {
  func.func @_dual_prompt_select_kernel(%arg0: i32, %arg1: memref<8x32xf32, #tpu.memory_space<vmem>>, %arg2: memref<32x128xf32, #tpu.memory_space<vmem>>, %arg3: memref<128x256xf32, #tpu.memory_space<vmem>>, %arg4: memref<8x128xf32, #tpu.memory_space<vmem>>, %arg5: memref<8x256xf32, #tpu.memory_space<vmem>>) attributes {dimension_semantics = [#tpu.dimension_semantics<parallel>], iteration_bounds = array<i64: 1>, scalar_prefetch = 0 : i64, scratch_operands = 0 : i64, tpu.core_type = #tpu.core_type<tc>, window_params = [{transform_indices = @transform_0, window_bounds = array<i64: 8, 32>}, {pipeline_mode = #tpu.pipeline_mode<synchronous>, transform_indices = @transform_1, window_bounds = array<i64: 32, 128>}, {pipeline_mode = #tpu.pipeline_mode<synchronous>, transform_indices = @transform_2, window_bounds = array<i64: 128, 256>}, {transform_indices = @transform_3, window_bounds = array<i64: 8, 128>}, {transform_indices = @transform_4, window_bounds = array<i64: 8, 256>}]} {
    %c0 = arith.constant 0 : index
    %c0_0 = arith.constant 0 : index
    %0 = vector.load %arg1[%c0, %c0_0] : memref<8x32xf32, #tpu.memory_space<vmem>>, vector<8x32xf32>
    %c0_1 = arith.constant 0 : index
    %c0_2 = arith.constant 0 : index
    %1 = vector.load %arg2[%c0_1, %c0_2] : memref<32x128xf32, #tpu.memory_space<vmem>>, vector<32x128xf32>
    %cst = arith.constant dense<0.000000e+00> : vector<8x128xf32>
    %2 = tpu.matmul %0, %1, %cst {dimension_numbers = #tpu.dot_dimension_numbers<[1], [0], [0], [1], [0, 0, 1, 1], [], []>, precision = #tpu.contract_precision<fp32>} : vector<8x32xf32>, vector<32x128xf32>, vector<8x128xf32> -> vector<8x128xf32>
    %3 = arith.mulf %0, %0 : vector<8x32xf32>
    %cst_3 = arith.constant dense<0.000000e+00> : vector<8xf32>
    %4 = vector.multi_reduction <add>, %3, %cst_3 [1] : vector<8x32xf32> to vector<8xf32>
    %5 = vector.shape_cast %4 : vector<8xf32> to vector<8x1xf32>
    %cst_4 = arith.constant 1.000000e-24 : f32
    %6 = vector.broadcast %cst_4 : f32 to vector<8x1xf32>
    %7 = arith.maximumf %5, %6 : vector<8x1xf32>
    %8 = math.rsqrt %7 : vector<8x1xf32>
    %9 = vector.broadcast %8 : vector<8x1xf32> to vector<8x128xf32>
    %10 = arith.mulf %2, %9 : vector<8x128xf32>
    %c0_5 = arith.constant 0 : index
    %c0_6 = arith.constant 0 : index
    %11 = vector.load %arg4[%c0_5, %c0_6] : memref<8x128xf32, #tpu.memory_space<vmem>>, vector<8x128xf32>
    tpu.vector_store %arg4[%c0_5, %c0_6], %10 {strides = array<i32>} : memref<8x128xf32, #tpu.memory_space<vmem>>, vector<8x128xf32>,
    %12 = tpu.iota {dimensions = array<i32: 1>} : vector<8x128xi32>
    %c6_i32 = arith.constant 6 : i32
    %13 = vector.broadcast %c6_i32 : i32 to vector<8x128xi32>
    %14 = arith.cmpi slt, %12, %13 : vector<8x128xi32>
    %cst_7 = arith.constant 0xFF800000 : f32
    %15 = vector.broadcast %cst_7 : f32 to vector<8x128xf32>
    %16 = arith.select %14, %10, %15 : vector<8x128xi1>, vector<8x128xf32>
    %cst_8 = arith.constant dense<0xFF800000> : vector<8xf32>
    %17 = vector.multi_reduction <maximumf>, %16, %cst_8 [1] : vector<8x128xf32> to vector<8xf32>
    %18 = vector.shape_cast %17 : vector<8xf32> to vector<8x1xf32>
    %19 = vector.broadcast %18 : vector<8x1xf32> to vector<8x128xf32>
    %20 = arith.cmpf oge, %16, %19 : vector<8x128xf32>
    %c5_i32 = arith.constant 5 : i32
    %21 = vector.broadcast %c5_i32 : i32 to vector<8x128xi32>
    %22 = arith.select %20, %12, %21 : vector<8x128xi1>, vector<8x128xi32>
    %cst_9 = arith.constant dense<2147483647> : vector<8xi32>
    %23 = vector.multi_reduction <minsi>, %22, %cst_9 [1] : vector<8x128xi32> to vector<8xi32>
    %24 = vector.shape_cast %23 : vector<8xi32> to vector<8x1xi32>
    %25 = vector.broadcast %24 : vector<8x1xi32> to vector<8x128xi32>
    %26 = arith.cmpi eq, %12, %25 : vector<8x128xi32>
    %27 = arith.extui %26 : vector<8x128xi1> to vector<8x128xi32>
    %28 = arith.sitofp %27 : vector<8x128xi32> to vector<8x128xf32>
    %c0_10 = arith.constant 0 : index
    %c0_11 = arith.constant 0 : index
    %29 = vector.load %arg3[%c0_10, %c0_11] : memref<128x256xf32, #tpu.memory_space<vmem>>, vector<128x256xf32>
    %cst_12 = arith.constant dense<0.000000e+00> : vector<8x256xf32>
    %30 = tpu.matmul %28, %29, %cst_12 {dimension_numbers = #tpu.dot_dimension_numbers<[1], [0], [0], [1], [0, 0, 1, 1], [], []>, precision = #tpu.contract_precision<fp32>} : vector<8x128xf32>, vector<128x256xf32>, vector<8x256xf32> -> vector<8x256xf32>
    %c0_13 = arith.constant 0 : index
    %c0_14 = arith.constant 0 : index
    %31 = vector.load %arg5[%c0_13, %c0_14] : memref<8x256xf32, #tpu.memory_space<vmem>>, vector<8x256xf32>
    tpu.vector_store %arg5[%c0_13, %c0_14], %30 {strides = array<i32>} : memref<8x256xf32, #tpu.memory_space<vmem>>, vector<8x256xf32>,
    return
  }
  func.func @transform_0(%arg0: i32) -> (i32, i32) {
    %c0_i32 = arith.constant 0 : i32
    %c0_i32_0 = arith.constant 0 : i32
    return %arg0, %c0_i32 : i32, i32
  }
  func.func @transform_1(%arg0: i32) -> (i32, i32) {
    %c0_i32 = arith.constant 0 : i32
    %c0_i32_0 = arith.constant 0 : i32
    %c0_i32_1 = arith.constant 0 : i32
    return %c0_i32, %c0_i32_0 : i32, i32
  }
  func.func @transform_2(%arg0: i32) -> (i32, i32) {
    %c0_i32 = arith.constant 0 : i32
    %c0_i32_0 = arith.constant 0 : i32
    %c0_i32_1 = arith.constant 0 : i32
    return %c0_i32, %c0_i32_0 : i32, i32
  }
  func.func @transform_3(%arg0: i32) -> (i32, i32) {
    %c0_i32 = arith.constant 0 : i32
    %c0_i32_0 = arith.constant 0 : i32
    return %arg0, %c0_i32 : i32, i32
  }
  func.func @transform_4(%arg0: i32) -> (i32, i32) {
    %c0_i32 = arith.constant 0 : i32
    %c0_i32_0 = arith.constant 0 : i32
    return %arg0, %c0_i32 : i32, i32
  }
}

</mosaic_0001>

<bundles_post_ra>
// kernel: tpu_custom_call.1
= control target key start
LH: loop header
LB: loop body
LE: loop exit
PB: predicated region body
PF: predicated region fallthrough
CT: control target
= control target key end

     0   :  { %10 = vsyncpa [#allocation3], 0  ;;  %s2517_s0 = inlined_call_operand.hbm [shape: f32[8,32], index: 0, kind: input, shape index: {}]   ;;  %s2518_s1 = inlined_call_operand.hbm [shape: f32[32,128], index: 1, kind: input, shape index: {}]   ;;  %s2519_s2 = inlined_call_operand.hbm [shape: f32[128,256], index: 2, kind: input, shape index: {}]   ;;  %s2520_s3 = inlined_call_operand.hbm [shape: f32[8,128], index: 3, kind: output, shape index: {0}]   ;;  %s2521_s4 = inlined_call_operand.hbm [shape: f32[8,256], index: 4, kind: output, shape index: {1}]  }
   0x1   :  { %11 = vsyncpa [#allocation6], 0 }
   0x2   :  { %12 = vsyncpa [#allocation4], 0 }
   0x3   :  { %13 = vsyncpa [#allocation10], 0  ;;  %s1984_s15 = smov [#allocation5]   ;;  %s1866_s19 = scalar_lea.hbm %s2518_s1, 512 }
   0x4   :  { %s29_s16 = sshll.u32 %s1984_s15, 4  ;;  %p1867_p0 = scmp.ne.s32.totalorder %s2518_s1, %s1866_s19  ;;  %s30_s16 = int_to_ptr.vmem [resolvable:$true] %s29_s16 }
   0x5   :  { %p1870_p1 = scmp.lt.u32.totalorder %s1866_s19, %s2518_s1 }
   0x7   :  { %p1872_p2 = pnand %p1870_p1, %p1867_p0 }
   0x9   :  { %1875 = shalt.err (!%p1872_p2)
}
   0xa   :  { %s1876_s24 = scalar_lea.vmem %s30_s16, 512  ;;  %p1881_p4 = scmp.lt.s32.totalorder %s30_s16, %s30_s16 }
   0xb   :  { %p1877_p3 = scmp.ne.s32.totalorder %s30_s16, %s1876_s24  ;;  %p1882_p5 = scmp.lt.s32.totalorder %s1876_s24, %s1876_s24 }
   0xd   :  { %p1883_p6 = por %p1882_p5, %p1881_p4 }
   0xf   :  { %p1884_p7 = pnand %p1883_p6, %p1877_p3 }
  0x11   :  { %1887 = shalt.err (!%p1884_p7)
}
  0x12   :  { %s1985_s25 = smov 128   ;;  %s1986_s26 = smov 8  }
  0x13   :  { %35 = dma.hbm_to_vmem [thread:$0]  %s2518_s1, 512, %s30_s16, [#allocation6], %s1985_s25, %s1985_s25, %s1986_s26  }
  0x14   :  { %s1987_s29 = smov [#allocation2]   ;;  %s1988_s5 = smov [#allocation7]  }
  0x15   :  { %s20_s30 = sshll.u32 %s1987_s29, 4  ;;  %s41_s6 = sshll.u32 %s1988_s5, 4  ;;  %s21_s30 = int_to_ptr.vmem [resolvable:$true] %s20_s30  ;;  %s42_s6 = int_to_ptr.vmem [resolvable:$true] %s41_s6 }
  0x16   :  { %s1888_s9 = scalar_lea.hbm %s2517_s0, 128 }
  0x17   :  { %p1889_p8 = scmp.ne.s32.totalorder %s2517_s0, %s1888_s9  ;;  %p1892_p9 = scmp.lt.u32.totalorder %s1888_s9, %s2517_s0 }
  0x19   :  { %p1894_p10 = pnand %p1892_p9, %p1889_p8 }
  0x1b   :  { %1897 = shalt.err (!%p1894_p10)
}
  0x1c   :  { %s1898_s1 = scalar_lea.vmem %s21_s30, 128  ;;  %p1903_p12 = scmp.lt.s32.totalorder %s21_s30, %s21_s30 }
  0x1d   :  { %p1899_p11 = scmp.ne.s32.totalorder %s21_s30, %s1898_s1  ;;  %p1904_p13 = scmp.lt.s32.totalorder %s1898_s1, %s1898_s1 }
  0x1f   :  { %p1905_p0 = por %p1904_p13, %p1903_p12 }
  0x21   :  { %p1906_p1 = pnand %p1905_p0, %p1899_p11 }
  0x23   :  { %1909 = shalt.err (!%p1906_p1)
}
  0x24   :  { %23 = dma.hbm_to_vmem [thread:$0]  %s2517_s0, 128, %s21_s30, [#allocation3]  }
  0x25   :  { %s1910_s18 = scalar_lea.hbm %s2519_s2, 4096 }
  0x26   :  { %p1911_p2 = scmp.ne.s32.totalorder %s2519_s2, %s1910_s18  ;;  %p1914_p3 = scmp.lt.u32.totalorder %s1910_s18, %s2519_s2 }
  0x28   :  { %p1916_p4 = pnand %p1914_p3, %p1911_p2 }
  0x2a   :  { %1919 = shalt.err (!%p1916_p4)
}
  0x2b   :  { %s1920_s23 = scalar_lea.vmem %s42_s6, 4096  ;;  %p1925_p6 = scmp.lt.s32.totalorder %s42_s6, %s42_s6 }
  0x2c   :  { %p1921_p5 = scmp.ne.s32.totalorder %s42_s6, %s1920_s23  ;;  %p1926_p7 = scmp.lt.s32.totalorder %s1920_s23, %s1920_s23 }
  0x2e   :  { %p1927_p8 = por %p1926_p7, %p1925_p6 }
  0x30   :  { %p1928_p9 = pnand %p1927_p8, %p1921_p5 }
  0x32   :  { %1931 = shalt.err (!%p1928_p9)
}
  0x33   :  { %s1989_s0 = smov 256   ;;  %s1990_s24 = smov 16  }
  0x34   :  { %47 = dma.hbm_to_vmem [thread:$0]  %s2519_s2, 4096, %s42_s6, [#allocation6], %s1989_s0, %s1989_s0, %s1990_s24  }
  0x35   :  { %1976 = dma.done.wait [#allocation3], 128  }
  0x36   :  { %1977 = vsyncadd [#allocation3], 4294967168 }
  0x37   :  { %1978 = dma.done.wait [#allocation6], 4608  }
  0x38   :  { %1979 = vsyncadd [#allocation6], 4294962688  ;;  %v1991_v0 = vmov 0.0|0.0   ;;  %vm1992_vm0 = vmmov 0   ;;  %v2522_v1 = vmov 0.0   ;;  %vm62_vm1 = vcmask 261120  }
  0x39   :  { %1603 = vmatprep.subr.bf16.mxu0 %v1991_v0  ;;  %1545 = vmatprep.mubr.msk.f32.mxu0 %vm1992_vm0, %v2522_v1  ;;  %v58_v2 = vld [vmem:[#allocation5] sm:$0xff]  ;;  %v59_v3 = vld [vmem:[#allocation5 + $0x8] sm:$0xff]  ;;  %v60_v4 = vld [vmem:[#allocation5 + $0x10] sm:$0xff]  ;;  %v559_v45 = vlaneseq  ;;  %s1995_s2 = smov [#allocation8]  }
  0x3a   :  { %1084 = vmatprep.mubr.f32.mxu1 %v2522_v1  ;;  %v67_v5 = vand.u32 4294901760, %v58_v2  ;;  %v70_v6 = vand.u32 4294901760, %v59_v3  ;;  %v61_v7 = vld [vmem:[#allocation5 + $0x18] sm:$0xff]  ;;  %v73_v8 = vand.u32 4294901760, %v60_v4  ;;  %v585_v56 = vld [vmem:[#allocation7 + $0x8] sm:$0xff]  ;;  %v584_v58 = vld [vmem:[#allocation7] sm:$0xff] }
  0x3b   :  { %v57_v9 = vld [vmem:[#allocation2] sm:$0xff]  ;;  %v76_v10 = vand.u32 4294901760, %v61_v7  ;;  %v2086_v46 = vand.u32 127, %v559_v45  ;;  %v616_v59 = vand.u32 4294901760, %v585_v56  ;;  %v586_v61 = vld [vmem:[#allocation7 + $0x10] sm:$0xff]  ;;  %v618_v62 = vand.u32 4294901760, %v584_v58 }
  0x3c   :  { %v64_v11 = vsel %vm62_vm1, %v57_v9, 0  ;;  %v551_v12 = vmul.f32 %v57_v9, %v57_v9  ;;  %v1604_v13 = vpack.c.bf16 %v70_v6, %v67_v5  ;;  %v147_v14 = vsub.f32 %v58_v2, %v67_v5  ;;  %v587_v57 = vld [vmem:[#allocation7 + $0x18] sm:$0xff]  ;;  %v589_v63 = vld [vmem:[#allocation7 + $0x28] sm:$0xff]  ;;  %v588_v5 = vld [vmem:[#allocation7 + $0x20] sm:$0xff]  ;;  %s1479_s27 = sshll.u32 %s1995_s2, 4  ;;  %s1480_s27 = int_to_ptr.vmem [resolvable:$true] %s1479_s27 }
  0x3d   :  { %v154_v15 = vsub.f32 %v59_v3, %v70_v6  ;;  %v161_v16 = vsub.f32 %v60_v4, %v73_v8  ;;  %v168_v17 = vsub.f32 %v61_v7, %v76_v10  ;;  %v135_v18 = vand.u32 4294901760, %v64_v11  ;;  %v590_v6 = vld [vmem:[#allocation7 + $0x30] sm:$0xff]  ;;  %s1932_s28 = scalar_lea.vmem %s1480_s27, 128  ;;  %p1937_p11 = scmp.lt.s32.totalorder %s1480_s27, %s1480_s27 }
  0x3e   :  { %v552_v19 = vsel %vm62_vm1, %v551_v12, 0.0  ;;  %1605 = vmatpush3.bf16.msra.mxu0 %v1604_v13  ;;  %v1607_v20 = vpack.c.bf16 %v76_v10, %v73_v8  ;;  %v148_v21 = vand.u32 4294901760, %v147_v14  ;;  %vm561_vm2 = vcmp.lt.s32.totalorder %v2086_v46, 6  ;;  %p1933_p10 = scmp.ne.s32.totalorder %s1480_s27, %s1932_s28  ;;  %p1938_p12 = scmp.lt.s32.totalorder %s1932_s28, %s1932_s28 }
  0x3f   :  { %v155_v22 = vand.u32 4294901760, %v154_v15  ;;  %v162_v23 = vand.u32 4294901760, %v161_v16  ;;  %553 = vadd.xlane.f32.xlu0 %v552_v19  ;;  %1606 = vmatprep.subr.bf16.mxu0 %v1991_v0  ;;  %v136_v24 = vsub.f32 %v64_v11, %v135_v18  ;;  %v169_v25 = vand.u32 4294901760, %v168_v17 }
  0x40   :  { %v149_v26 = vsub.f32 %v147_v14, %v148_v21  ;;  %v1616_v39 = vpack.c.bf16 %v154_v15, %v147_v14  ;;  %v1619_v40 = vpack.c.bf16 %v168_v17, %v161_v16  ;;  %v620_v60 = vand.u32 4294901760, %v587_v57  ;;  %p1939_p13 = por %p1938_p12, %p1937_p11 }
  0x41   :  { %v156_v27 = vsub.f32 %v154_v15, %v155_v22  ;;  %v163_v28 = vsub.f32 %v161_v16, %v162_v23  ;;  %v137_v29 = vand.u32 4294901760, %v136_v24  ;;  %v170_v30 = vsub.f32 %v168_v17, %v169_v25  ;;  %v593_v15 = vld [vmem:[#allocation7 + $0x48] sm:$0xff]  ;;  %v595_v16 = vld [vmem:[#allocation7 + $0x58] sm:$0xff]  ;;  %v592_v17 = vld [vmem:[#allocation7 + $0x40] sm:$0xff] }
  0x42   :  { %1608 = vmatpush3.bf16.msra.mxu0 %v1607_v20  ;;  %v150_v31 = vand.u32 4294901760, %v149_v26  ;;  %v1628_v41 = vpack.c.bf16 %v155_v22, %v148_v21  ;;  %v1631_v42 = vpack.c.bf16 %v169_v25, %v162_v23  ;;  %v622_v2 = vand.u32 4294901760, %v586_v61  ;;  %v594_v21 = vld [vmem:[#allocation7 + $0x50] sm:$0xff]  ;;  %v597_v25 = vld [vmem:[#allocation7 + $0x68] sm:$0xff]  ;;  %p1940_p0 = pnand %p1939_p13, %p1933_p10 }
  0x43   :  { %v157_v32 = vand.u32 4294901760, %v156_v27  ;;  %v138_v33 = vsub.f32 %v136_v24, %v137_v29  ;;  %1609 = vmatprep.subr.bf16.mxu0 %v1991_v0  ;;  %v164_v35 = vand.u32 4294901760, %v163_v28  ;;  %v171_v36 = vand.u32 4294901760, %v170_v30  ;;  %v599_v30 = vld [vmem:[#allocation7 + $0x78] sm:$0xff] }
  0x44   :  { %v624_v3 = vand.u32 4294901760, %v589_v63  ;;  %v2096_v7 = vsub.f32 %v585_v56, %v616_v59  ;;  %v2098_v8 = vsub.f32 %v587_v57, %v620_v60  ;;  %v2100_v9 = vsub.f32 %v584_v58, %v618_v62 }
  0x45   :  { %v1610_v34 = vpack.c.bf16 %v157_v32, %v150_v31  ;;  %v139_v37 = vand.u32 4294901760, %v138_v33  ;;  %v1613_v38 = vpack.c.bf16 %v171_v36, %v164_v35  ;;  %v626_v10 = vand.u32 4294901760, %v588_v5  ;;  %v596_v31 = vld [vmem:[#allocation7 + $0x60] sm:$0xff]  ;;  %v598_v32 = vld [vmem:[#allocation7 + $0x70] sm:$0xff] }
  0x46   :  { %v2102_v11 = vsub.f32 %v586_v61, %v622_v2  ;;  %v2104_v12 = vsub.f32 %v589_v63, %v624_v3  ;;  %v630_v14 = vand.u32 4294901760, %v590_v6  ;;  %v2121_v26 = vpack.c.bf16 %v622_v2, %v618_v62  ;;  %v2157_v61 = vld [vmem:[#allocation7 + $0xb8] sm:$0xff] }
  0x47   :  { %1546 = vmatmul.mubr.f32.vlgmr.msra.gmra.mrb[0].mxu0 %v139_v37  ;;  %v2110_v19 = vsub.f32 %v588_v5, %v626_v10  ;;  %v632_v27 = vand.u32 4294901760, %v593_v15  ;;  %v636_v28 = vand.u32 4294901760, %v595_v16  ;;  %v646_v45 = vand.u32 4294901760, %v598_v32 }
  0x48   :  { %1611 = vmatpush3.bf16.msra.mxu0 %v1610_v34  ;;  %1556 = vmatprep.mubr.msk.f32.mxu0 %vm1992_vm0, %v2522_v1  ;;  %v1705_v22 = vpack.c.bf16 %v2102_v11, %v2100_v9  ;;  %2560 = vst [vmem:[#allocation16_spill] sm:$0xff] %v2121_v26  ;;  %v638_v34 = vand.u32 4294901760, %v594_v21  ;;  %v2127_v36 = vpack.c.bf16 %v630_v14, %v626_v10 }
  0x49   :  { %1612 = vmatprep.subr.bf16.mxu0 %v1991_v0  ;;  %v2130_v37 = vsub.f32 %v593_v15, %v632_v27 }
  0x4c   :  { %1614 = vmatpush3.bf16.msra.mxu0 %v1613_v38  ;;  %v2132_v38 = vsub.f32 %v595_v16, %v636_v28 }
  0x4d   :  { %1615 = vmatprep.subr.bf16.mxu0 %v1991_v0 }
  0x4f   :  { %1557 = vmatmul.mubr.f32.vlgmr.msra.gmra.mrb[0].mxu0 %v135_v18 }
  0x50   :  { %1617 = vmatpush3.bf16.msra.mxu0 %v1616_v39  ;;  %1567 = vmatprep.mubr.msk.f32.mxu0 %vm1992_vm0, %v2522_v1 }
  0x51   :  { %1618 = vmatprep.subr.bf16.mxu0 %v1991_v0 }
  0x54   :  { %1620 = vmatpush3.bf16.msra.mxu0 %v1619_v40  ;;  %v640_v40 = vand.u32 4294901760, %v597_v25 }
  0x55   :  { %1621 = vmatprep.subr.bf16.mxu0 %v1991_v0 }
  0x57   :  { %1568 = vmatmul.mubr.f32.vlgmr.msra.gmra.mrb[0].mxu0 %v136_v24  ;;  %v2118_v24 = vsub.f32 %v590_v6, %v630_v14  ;;  %v2171_v14 = vld [vmem:[#allocation7 + $0xc8] sm:$0xff] }
  0x58   :  { %1623 = vmatpush3.bf16.msra.mxu0 %v1604_v13  ;;  %1578 = vmatprep.mubr.msk.f32.mxu0 %vm1992_vm0, %v2522_v1 }
  0x59   :  { %1624 = vmatprep.subr.bf16.mxu0 %v1991_v0  ;;  %v1709_v33 = vpack.c.bf16 %v2118_v24, %v2110_v19 }
  0x5c   :  { %1626 = vmatpush3.bf16.msra.mxu0 %v1607_v20 }
  0x5d   :  { %1627 = vmatprep.subr.bf16.mxu0 %v1991_v0 }
  0x5f   :  { %1579 = vmatmul.mubr.f32.vlgmr.msra.gmra.mrb[0].mxu0 %v137_v29  ;;  %v634_v29 = vand.u32 4294901760, %v592_v17 }
  0x60   :  { %1629 = vmatpush3.bf16.msra.mxu0 %v1628_v41  ;;  %1589 = vmatprep.mubr.msk.f32.mxu0 %vm1992_vm0, %v2522_v1  ;;  %v601_v41 = vld [vmem:[#allocation7 + $0x88] sm:$0xff] }
  0x61   :  { %1630 = vmatprep.subr.bf16.mxu0 %v1991_v0  ;;  %v2134_v39 = vsub.f32 %v592_v17, %v634_v29  ;;  %v648_v62 = vand.u32 4294901760, %v601_v41 }
  0x63   :  { %v2173_v15 = vsub.f32 %v601_v41, %v648_v62 }
  0x64   :  { %1632 = vmatpush3.bf16.msra.mxu0 %v1631_v42  ;;  %v2136_v42 = vsub.f32 %v594_v21, %v638_v34 }
  0x65   :  { %1633 = vmatprep.subr.bf16.mxu0 %v1991_v0 }
  0x66   :  { %v1713_v56 = vpack.c.bf16 %v2136_v42, %v2134_v39 }
  0x67   :  { %1590 = vmatmul.mubr.f32.vlgmr.msra.gmra.mrb[0].mxu0 %v135_v18 }
  0x68   :  { %1635 = vmatpush3.bf16.msra.mxu0 %v1604_v13  ;;  %1600 = vmatprep.mubr.msk.f32.mxu0 %vm1992_vm0, %v2522_v1 }
  0x69   :  { %1636 = vmatprep.subr.bf16.mxu0 %v1991_v0  ;;  %v591_v0 = vld [vmem:[#allocation7 + $0x38] sm:$0xff] }
  0x6a   :  { %v628_v4 = vand.u32 4294901760, %v591_v0 }
  0x6c   :  { %1638 = vmatpush3.bf16.msra.mxu0 %v1607_v20  ;;  %v2106_v13 = vsub.f32 %v591_v0, %v628_v4  ;;  %v2112_v20 = vpack.c.bf16 %v620_v60, %v616_v59  ;;  %v2125_v35 = vpack.c.bf16 %v628_v4, %v624_v3  ;;  %v2153_v59 = vsub.f32 %v598_v32, %v646_v45  ;;  %v2155_v60 = vld [vmem:[#allocation7 + $0xa8] sm:$0xff]  ;;  %v2160_v3 = vld [vmem:[#allocation7 + $0xa0] sm:$0xff]  ;;  %v2162_v4 = vld [vmem:[#allocation7 + $0xb0] sm:$0xff] }
  0x6d   :  { %v656_v21 = vand.u32 4294901760, %v2155_v60 }
  0x6e   :  { %2559 = vst [vmem:[#allocation15_spill] sm:$0xff] %v2112_v20  ;;  %v1707_v23 = vpack.c.bf16 %v2106_v13, %v2104_v12  ;;  %1640 = vmatprep.subr.bf16.mxu0 %v2112_v20  ;;  %2561 = vst [vmem:[#allocation17_spill] sm:$0xff] %v2125_v35 }
  0x6f   :  { %1601 = vmatmul.mubr.f32.vlgmr.msra.gmra.mrb[0].mxu0 %v135_v18  ;;  %v1703_v18 = vpack.c.bf16 %v2098_v8, %v2096_v7 }
  0x70   :  { %712 = vmatprep.mubr.f32.mxu0 %v2522_v1  ;;  %1642 = vmatpush1.bf16.msra.mxu0 %v2121_v26 }
  0x71   :  { %1704 = vmatprep.subr.bf16.mxu1 %v1703_v18  ;;  %1644 = vmatprep.subr.bf16.mxu0 %v2125_v35 }
  0x72   :  { %1706 = vmatpush1.bf16.msra.mxu1 %v1705_v22  ;;  %v660_v22 = vand.u32 4294901760, %v2157_v61 }
  0x73   :  { %1708 = vmatprep.subr.bf16.mxu1 %v1707_v23  ;;  %v658_v23 = vand.u32 4294901760, %v2160_v3 }
  0x74   :  { %1646 = vmatpush1.bf16.msra.mxu0 %v2127_v36  ;;  %v2198_v32 = vsub.f32 %v2157_v61, %v660_v22 }
  0x75   :  { %v2206_v41 = vsub.f32 %v2160_v3, %v658_v23 }
  0x76   :  { %1710 = vmatpush1.bf16.msra.mxu1 %v1709_v33 }
  0xcc   :  { %v554_v43 = vpop.xlane.xlu0 %553 }
  0xcd   :  { %v555_v44 = vmax.f32 %v554_v43, 1e-24  ;;  %v644_v43 = vand.u32 4294901760, %v599_v30 }
  0xcf   :  { %1864 = vrsqrt.f32 %v555_v44  ;;  %v642_v44 = vand.u32 4294901760, %v596_v31  ;;  %v2149_v57 = vsub.f32 %v599_v30, %v644_v43  ;;  %v2169_v10 = vpack.c.bf16 %v644_v43, %v640_v40 }
  0xd0   :  { %v664_v30 = vand.u32 4294901760, %v2171_v14 }
  0xd1   :  { %v2151_v58 = vsub.f32 %v596_v31, %v642_v44  ;;  %v2195_v31 = vsub.f32 %v2155_v60, %v656_v21 }
  0xd3   :  { %v1717_v6 = vpack.c.bf16 %v2153_v59, %v2151_v58 }
  0xd9   :  { %v1865_v47 = vpop.eup %1864 }
 0x142   :  { %v547_v48 = vpop.f32.mrb[0].mxu0 }
 0x143   :  { %v557_v49 = vmul.f32 %v1865_v47, %v547_v48  ;;  %v1602_v50 = vpop.f32.mrb[1].mxu0  ;;  %v603_v47 = vld [vmem:[#allocation7 + $0x98] sm:$0xff]  ;;  %v600_v48 = vld [vmem:[#allocation7 + $0x80] sm:$0xff] }
 0x144   :  { %v1711_v50 = vpack.c.bf16 %v2132_v38, %v2130_v37  ;;  %v652_v63 = vand.u32 4294901760, %v603_v47  ;;  %v650_v0 = vand.u32 4294901760, %v600_v48 }
 0x145   :  { %558 = vst [vmem:[#allocation8] sm:$0xff] %v557_v49  ;;  %v562_v51 = vsel %vm561_vm2, %v557_v49, -inf  ;;  %v602_v49 = vld [vmem:[#allocation7 + $0x90] sm:$0xff] }
 0x146   :  { %563 = vmax.xlane.f32.xlu0 %v562_v51  ;;  %1712 = vmatprep.subr.bf16.mxu1 %v1711_v50  ;;  %v654_v2 = vand.u32 4294901760, %v602_v49  ;;  %v2175_v16 = vsub.f32 %v603_v47, %v652_v63  ;;  %v2177_v17 = vsub.f32 %v600_v48, %v650_v0  ;;  %v2200_v33 = vpack.c.bf16 %v652_v63, %v648_v62  ;;  %v608_v63 = vld [vmem:[#allocation7 + $0xc0] sm:$0xff] }
 0x147   :  { %1714 = vmatpush1.bf16.msra.mxu1 %v1713_v56  ;;  %v2217_v47 = vsub.f32 %v2171_v14, %v664_v30  ;;  %v615_v14 = vld [vmem:[#allocation7 + $0xf8] sm:$0xff] }
 0x148   :  { %v2179_v18 = vsub.f32 %v602_v49, %v654_v2  ;;  %2563 = vst [vmem:[#allocation19_spill] sm:$0xff] %v2200_v33 }
 0x1d3   :  { %v564_v52 = vpop.xlane.xlu0 %563 }
 0x1d4   :  { %vm565_vm3 = vcmp.ge.f32.partialorder %v562_v51, %v564_v52  ;;  %v2141_v51 = vsub.f32 %v597_v25, %v640_v40  ;;  %v2143_v52 = vpack.c.bf16 %v636_v28, %v632_v27  ;;  %v662_v25 = vand.u32 4294901760, %v2162_v4  ;;  %v2185_v27 = vld [vmem:[#allocation7 + $0xd8] sm:$0xff] }
 0x1d5   :  { %v2090_v53 = vsel %vm565_vm3, %v2086_v46, 5  ;;  %v1719_v28 = vpack.c.bf16 %v2175_v16, %v2173_v15  ;;  %v1721_v40 = vpack.c.bf16 %v2179_v18, %v2177_v17 }
 0x1d6   :  { %v568_v54 = vshra.s32 %v2090_v53, 16  ;;  %v1715_v5 = vpack.c.bf16 %v2149_v57, %v2141_v51  ;;  %1648 = vmatprep.subr.bf16.mxu0 %v2143_v52  ;;  %v2209_v43 = vsub.f32 %v2162_v4, %v662_v25  ;;  %v567_v56 = vand.u32 65535, %v2090_v53 }
 0x1d7   :  { %v676_v53 = vand.u32 4294901760, %v615_v14 }
 0x1d8   :  { %v2093_v55 = vcvt.s32.f32 %v568_v54  ;;  %v2145_v54 = vpack.c.bf16 %v638_v34, %v634_v29  ;;  %1716 = vmatprep.subr.bf16.mxu1 %v1715_v5  ;;  %v2190_v29 = vpack.c.bf16 %v646_v45, %v642_v44  ;;  %v668_v34 = vand.u32 4294901760, %v2185_v27 }
 0x1d9   :  { %1718 = vmatpush1.bf16.msra.mxu1 %v1717_v6  ;;  %v2211_v44 = vpack.c.bf16 %v654_v2, %v650_v0  ;;  %v1723_v45 = vpack.c.bf16 %v2198_v32, %v2195_v31  ;;  %v1725_v49 = vpack.c.bf16 %v2209_v43, %v2206_v41  ;;  %v569_v61 = vcvt.s32.f32 %v567_v56  ;;  %v610_v0 = vld [vmem:[#allocation7 + $0xd0] sm:$0xff]  ;;  %v613_v6 = vld [vmem:[#allocation7 + $0xe8] sm:$0xff] }
 0x1da   :  { %571 = vmin.xlane.f32.xlu1 %v2093_v55  ;;  %1650 = vmatpush1.bf16.msra.mxu0 %v2145_v54  ;;  %2562 = vst [vmem:[#allocation18_spill] sm:$0xff] %v2190_v29  ;;  %v2220_v48 = vsub.f32 %v2185_v27, %v668_v34  ;;  %v666_v2 = vand.u32 4294901760, %v608_v63  ;;  %v670_v3 = vand.u32 4294901760, %v610_v0  ;;  %v672_v27 = vand.u32 4294901760, %v613_v6 }
 0x1db   :  { %1652 = vmatprep.subr.bf16.mxu0 %v2169_v10  ;;  %2564 = vst [vmem:[#allocation20_spill] sm:$0xff] %v2211_v44  ;;  %1720 = vmatprep.subr.bf16.mxu1 %v1719_v28  ;;  %v612_v28 = vld [vmem:[#allocation7 + $0xe0] sm:$0xff] }
 0x1dc   :  { %v1727_v50 = vpack.c.bf16 %v2220_v48, %v2217_v47  ;;  %v2233_v4 = vsub.f32 %v608_v63, %v666_v2  ;;  %v2235_v5 = vsub.f32 %v610_v0, %v670_v3  ;;  %v893_v56 = vsub.f32 %v613_v6, %v672_v27 }
 0x1dd   :  { %1722 = vmatpush1.bf16.msra.mxu1 %v1721_v40  ;;  %v614_v40 = vld [vmem:[#allocation7 + $0xf0] sm:$0xff] }
 0x1de   :  { %1654 = vmatpush1.bf16.msra.mxu0 %v2190_v29  ;;  %1724 = vmatprep.subr.bf16.mxu1 %v1723_v45  ;;  %v1729_v45 = vpack.c.bf16 %v2235_v5, %v2233_v4  ;;  %v2247_v29 = vpack.c.bf16 %v670_v3, %v666_v2  ;;  %v876_v3 = vand.u32 4294901760, %v2233_v4  ;;  %v888_v6 = vand.u32 4294901760, %v2235_v5 }
 0x1df   :  { %1656 = vmatprep.subr.bf16.mxu0 %v2200_v33  ;;  %v2245_v33 = vpack.c.bf16 %v668_v34, %v664_v30 }
 0x1e1   :  { %1726 = vmatpush1.bf16.msra.mxu1 %v1725_v49  ;;  %v678_v49 = vand.u32 4294901760, %v614_v40 }
 0x1e2   :  { %1658 = vmatpush1.bf16.msra.mxu0 %v2211_v44  ;;  %1728 = vmatprep.subr.bf16.mxu1 %v1727_v50  ;;  %v2239_v50 = vpack.c.bf16 %v660_v22, %v656_v21  ;;  %v726_v21 = vand.u32 4294901760, %v2096_v7  ;;  %v738_v22 = vand.u32 4294901760, %v2098_v8 }
 0x1e3   :  { %v911_v0 = vsub.f32 %v614_v40, %v678_v49 }
 0x1e4   :  { %1660 = vmatprep.subr.bf16.mxu0 %v2239_v50 }
 0x1e5   :  { %1730 = vmatpush1.bf16.msra.mxu1 %v1729_v45  ;;  %v912_v45 = vand.u32 4294901760, %v911_v0 }
 0x267   :  { %v2229_v60 = vpop.xlane.xlu1 %571 }
 0x268   :  { %vm573_vm4 = vcmp.eq.f32.partialorder %v2093_v55, %v2229_v60  ;;  %v674_v55 = vand.u32 4294901760, %v612_v28 }
 0x269   :  { %v574_v62 = vsel %vm573_vm4, %v569_v61, inf  ;;  %v905_v61 = vsub.f32 %v615_v14, %v676_v53  ;;  %v877_v14 = vsub.f32 %v2233_v4, %v876_v3 }
 0x26a   :  { %575 = vmin.xlane.f32.xlu1 %v574_v62  ;;  %v2241_v62 = vpack.c.bf16 %v662_v25, %v658_v23  ;;  %v899_v63 = vsub.f32 %v612_v28, %v674_v55  ;;  %v2254_v23 = vpack.c.bf16 %v676_v53, %v672_v27  ;;  %v727_v25 = vsub.f32 %v2096_v7, %v726_v21 }
 0x26b   :  { %v1731_v1 = vpack.c.bf16 %v905_v61, %v893_v56  ;;  %v2258_v30 = vpack.c.bf16 %v678_v49, %v674_v55  ;;  %v889_v7 = vsub.f32 %v2235_v5, %v888_v6  ;;  %v894_v27 = vand.u32 4294901760, %v893_v56 }
 0x26c   :  { %1662 = vmatpush1.bf16.msra.mxu0 %v2241_v62  ;;  %v1733_v44 = vpack.c.bf16 %v911_v0, %v899_v63  ;;  %2565 = vst [vmem:[#allocation21_spill] sm:$0xff] %v2254_v23  ;;  %v728_v34 = vand.u32 4294901760, %v727_v25  ;;  %v878_v53 = vand.u32 4294901760, %v877_v14  ;;  %v900_v40 = vand.u32 4294901760, %v899_v63 }
 0x26d   :  { %1732 = vmatprep.subr.bf16.mxu1 %v1731_v1  ;;  %1664 = vmatprep.subr.bf16.mxu0 %v2245_v33  ;;  %v739_v1 = vsub.f32 %v2098_v8, %v738_v22  ;;  %2566 = vst [vmem:[#allocation22_spill] sm:$0xff] %v2258_v30  ;;  %v906_v8 = vand.u32 4294901760, %v905_v61  ;;  %v890_v28 = vand.u32 4294901760, %v889_v7  ;;  %v895_v55 = vsub.f32 %v893_v56, %v894_v27 }
 0x26e   :  { %1734 = vmatpush1.bf16.msra.mxu1 %v1733_v44  ;;  %v2274_v14 = vpack.c.bf16 %v888_v6, %v876_v3  ;;  %v2278_v56 = vpack.c.bf16 %v912_v45, %v900_v40 }
 0x26f   :  { %1736 = vmatprep.subr.bf16.mxu1 %v2112_v20  ;;  %v740_v44 = vand.u32 4294901760, %v739_v1  ;;  %v907_v49 = vsub.f32 %v905_v61, %v906_v8  ;;  %v2266_v25 = vpack.c.bf16 %v890_v28, %v878_v53  ;;  %v901_v1 = vsub.f32 %v899_v63, %v900_v40 }
 0x270   :  { %1666 = vmatpush1.bf16.msra.mxu0 %v2247_v29  ;;  %2567 = vst [vmem:[#allocation23_spill] sm:$0xff] %v2274_v14  ;;  %v2276_v7 = vpack.c.bf16 %v906_v8, %v894_v27  ;;  %2569 = vst [vmem:[#allocation25_spill] sm:$0xff] %v2278_v56  ;;  %v578_v61 = vcvt.f32.s32 %v2229_v60  ;;  %v2540_v63 = vand.u32 4294901760, %v2100_v9  ;;  %v2538_v8 = vand.u32 4294901760, %v2110_v19 }
 0x271   :  { %1668 = vmatprep.subr.bf16.mxu0 %v2254_v23  ;;  %v1671_v2 = vpack.c.bf16 %v740_v44, %v728_v34  ;;  %v913_v34 = vsub.f32 %v911_v0, %v912_v45  ;;  %v2268_v44 = vpack.c.bf16 %v738_v22, %v726_v21  ;;  %v908_v20 = vand.u32 4294901760, %v907_v49 }
 0x272   :  { %2568 = vst [vmem:[#allocation24_spill] sm:$0xff] %v2276_v7  ;;  %v2537_v0 = vand.u32 4294901760, %v2102_v11  ;;  %v2536_v22 = vand.u32 4294901760, %v2104_v12  ;;  %v579_v53 = vshll.u32 %v578_v61, 16  ;;  %v733_v3 = vsub.f32 %v2100_v9, %v2540_v63 }
 0x273   :  { %v914_v4 = vand.u32 4294901760, %v913_v34  ;;  %v2539_v28 = vand.u32 4294901760, %v2118_v24  ;;  %v2542_v45 = vand.u32 4294901760, %v2130_v37  ;;  %v2571_v49 = vmov 0.0  }
 0x274   :  { %1670 = vmatpush1.bf16.msra.mxu0 %v2258_v30  ;;  %v902_v30 = vand.u32 4294901760, %v901_v1  ;;  %v745_v60 = vsub.f32 %v2102_v11, %v2537_v0  ;;  %v751_v27 = vsub.f32 %v2104_v12, %v2536_v22  ;;  %v734_v34 = vand.u32 4294901760, %v733_v3 }
 0x275   :  { %1672 = vmatprep.subr.bf16.mxu0 %v1671_v2  ;;  %v896_v2 = vand.u32 4294901760, %v895_v55  ;;  %v2541_v55 = vand.u32 4294901760, %v2132_v38  ;;  %v757_v22 = vsub.f32 %v2110_v19, %v2538_v8  ;;  %v769_v3 = vsub.f32 %v2118_v24, %v2539_v28 }
 0x276   :  { %v2272_v5 = vpack.c.bf16 %v914_v4, %v902_v30  ;;  %v2535_v30 = vand.u32 4294901760, %v2106_v13  ;;  %v2544_v4 = vand.u32 4294901760, %v2136_v42  ;;  %v2557_v63 = vand.u32 4294901760, %v2173_v15 }
 0x277   :  { %v2270_v23 = vpack.c.bf16 %v908_v20, %v896_v2  ;;  %v2543_v2 = vand.u32 4294901760, %v2134_v39  ;;  %v2556_v56 = vand.u32 4294901760, %v2175_v16 }
 0x278   :  { %v763_v40 = vsub.f32 %v2106_v13, %v2535_v30  ;;  %v752_v30 = vand.u32 4294901760, %v751_v27  ;;  %v787_v27 = vsub.f32 %v2132_v38, %v2541_v55  ;;  %v793_v28 = vsub.f32 %v2136_v42, %v2544_v4 }
 0x279   :  { %v781_v8 = vsub.f32 %v2134_v39, %v2543_v2 }
 0x2f7   :  { %v576_v21 = vpop.xlane.xlu1 %575 }
 0x2f8   :  { %v577_v20 = vcvt.f32.s32 %v576_v21  ;;  %v746_v21 = vand.u32 4294901760, %v745_v60  ;;  %v775_v60 = vsub.f32 %v2130_v37, %v2542_v45 }
 0x2fa   :  { %v2288_v6 = vadd.s32 %v579_v53, %v577_v20  ;;  %v2549_v53 = vand.u32 4294901760, %v2141_v51  ;;  %v2551_v20 = vand.u32 4294901760, %v2149_v57  ;;  %v1673_v45 = vpack.c.bf16 %v746_v21, %v734_v34 }
 0x2fb   :  { %v776_v14 = vand.u32 4294901760, %v775_v60  ;;  %v782_v34 = vand.u32 4294901760, %v781_v8  ;;  %v794_v21 = vand.u32 4294901760, %v793_v28  ;;  %v823_v28 = vsub.f32 %v2173_v15, %v2557_v63 }
 0x2fc   :  { %2570 = vst [vmem:[#allocation26_spill] sm:$0xff] %v2288_v6  ;;  %vm581_vm5 = vcmp.eq.s32.totalorder %v2086_v46, %v2288_v6  ;;  %v799_v2 = vsub.f32 %v2141_v51, %v2549_v53  ;;  %v811_v4 = vsub.f32 %v2149_v57, %v2551_v20  ;;  %v788_v6 = vand.u32 4294901760, %v787_v27 }
 0x2fd   :  { %v1503_v1 = vsel %vm581_vm5, 1.0, %v2571_v49  ;;  %v2572_v53 = vand.u32 4294901760, %v2151_v58  ;;  %v2573_v20 = vand.u32 4294901760, %v2153_v59 }
 0x2fe   :  { %v2311_v61 = vsub.f32 %v1503_v1, %v1503_v1  ;;  %v764_v1 = vand.u32 4294901760, %v763_v40  ;;  %v758_v40 = vand.u32 4294901760, %v757_v22 }
 0x2ff   :  { %v817_v22 = vsub.f32 %v2153_v59, %v2573_v20 }
 0x300   :  { %v2550_v0 = vand.u32 4294901760, %v2311_v61  ;;  %1087 = vmatmul.mubr.f32.vlgmr.msra.gmra.mrb[0].mxu1 %v2311_v61  ;;  %v1675_v7 = vpack.c.bf16 %v764_v1, %v752_v30  ;;  %v2555_v30 = vand.u32 4294901760, %v2177_v17  ;;  %v2552_v1 = vand.u32 4294901760, %v2179_v18 }
 0x301   :  { %1738 = vmatpush1.bf16.msra.mxu1 %v2121_v26  ;;  %1189 = vmatprep.mubr.f32.mxu1 %v2571_v49  ;;  %v770_v26 = vand.u32 4294901760, %v769_v3  ;;  %v800_v3 = vand.u32 4294901760, %v799_v2  ;;  %v2553_v2 = vand.u32 4294901760, %v2195_v31  ;;  %v818_v60 = vand.u32 4294901760, %v817_v22 }
 0x302   :  { %1740 = vmatprep.subr.bf16.mxu1 %v2125_v35  ;;  %v716_v55 = vsub.f32 %v2311_v61, %v2550_v0  ;;  %v805_v0 = vsub.f32 %v2151_v58, %v2572_v53  ;;  %v835_v53 = vsub.f32 %v2175_v16, %v2556_v56  ;;  %v829_v27 = vsub.f32 %v2177_v17, %v2555_v30 }
 0x303   :  { %v1677_v8 = vpack.c.bf16 %v770_v26, %v758_v40  ;;  %v852_v40 = vand.u32 4294901760, %v2206_v41  ;;  %v870_v22 = vand.u32 4294901760, %v2217_v47 }
 0x304   :  { %v717_v35 = vand.u32 4294901760, %v716_v55  ;;  %v812_v55 = vand.u32 4294901760, %v811_v4  ;;  %v2554_v4 = vand.u32 4294901760, %v2198_v32  ;;  %v806_v26 = vand.u32 4294901760, %v805_v0 }
 0x305   :  { %1742 = vmatpush1.bf16.msra.mxu1 %v2127_v36  ;;  %v847_v0 = vsub.f32 %v2195_v31, %v2553_v2  ;;  %v853_v2 = vsub.f32 %v2206_v41, %v852_v40  ;;  %v871_v63 = vsub.f32 %v2217_v47, %v870_v22  ;;  %v2606_v41 = vld [vmem:[#allocation16_spill] sm:$0xff] }
 0x306   :  { %718 = vmatmul.mubr.f32.vlgmr.msra.gmra.mrb[2].mxu0 %v717_v35  ;;  %1744 = vmatprep.subr.bf16.mxu1 %v2143_v52  ;;  %v1679_v35 = vpack.c.bf16 %v788_v6, %v776_v14  ;;  %v1683_v20 = vpack.c.bf16 %v812_v55, %v800_v3  ;;  %v841_v14 = vsub.f32 %v2179_v18, %v2552_v1  ;;  %v836_v6 = vand.u32 4294901760, %v835_v53  ;;  %v2574_v55 = vld [vmem:[#allocation18_spill] sm:$0xff] }
 0x307   :  { %1674 = vmatpush1.bf16.msra.mxu0 %v1673_v45  ;;  %948 = vmatprep.mubr.f32.mxu0 %v2571_v49  ;;  %v1681_v45 = vpack.c.bf16 %v794_v21, %v782_v34  ;;  %v864_v34 = vand.u32 4294901760, %v2209_v43  ;;  %v859_v21 = vsub.f32 %v2198_v32, %v2554_v4  ;;  %v2558_v3 = vand.u32 4294901760, %v2220_v48 }
 0x308   :  { %1676 = vmatprep.subr.bf16.mxu0 %v1675_v7  ;;  %v824_v7 = vand.u32 4294901760, %v823_v28  ;;  %v1685_v28 = vpack.c.bf16 %v818_v60, %v806_v26  ;;  %v830_v53 = vand.u32 4294901760, %v829_v27  ;;  %v842_v1 = vand.u32 4294901760, %v841_v14  ;;  %v2576_v26 = vld [vmem:[#allocation20_spill] sm:$0xff] }
 0x309   :  { %1746 = vmatpush1.bf16.msra.mxu1 %v2145_v54  ;;  %v865_v4 = vsub.f32 %v2209_v43, %v864_v34  ;;  %v848_v30 = vand.u32 4294901760, %v847_v0  ;;  %v860_v56 = vand.u32 4294901760, %v859_v21  ;;  %v854_v27 = vand.u32 4294901760, %v853_v2  ;;  %v2607_v43 = vld [vmem:[#allocation17_spill] sm:$0xff] }
 0x30a   :  { %1748 = vmatprep.subr.bf16.mxu1 %v2169_v10  ;;  %v1689_v60 = vpack.c.bf16 %v842_v1, %v830_v53  ;;  %v2578_v1 = vld [vmem:[#allocation22_spill] sm:$0xff]  ;;  %v2581_v2 = vand.u32 4294901760, %v2104_v12  ;;  %v2583_v53 = vand.u32 4294901760, %v2311_v61  ;;  %v2586_v12 = vand.u32 4294901760, %v2130_v37 }
 0x30b   :  { %1678 = vmatpush1.bf16.msra.mxu0 %v1677_v8  ;;  %v2575_v8 = vld [vmem:[#allocation19_spill] sm:$0xff]  ;;  %v866_v14 = vand.u32 4294901760, %v865_v4  ;;  %v2582_v4 = vand.u32 4294901760, %v2106_v13  ;;  %v2587_v13 = vand.u32 4294901760, %v2132_v38  ;;  %v2592_v37 = vand.u32 4294901760, %v2149_v57 }
 0x30c   :  { %1680 = vmatprep.subr.bf16.mxu0 %v1679_v35  ;;  %v1687_v35 = vpack.c.bf16 %v836_v6, %v824_v7  ;;  %v872_v7 = vand.u32 4294901760, %v871_v63  ;;  %v2580_v63 = vand.u32 4294901760, %v2102_v11  ;;  %v2585_v11 = vand.u32 4294901760, %v2118_v24 }
 0x30d   :  { %1750 = vmatpush1.bf16.msra.mxu1 %v2574_v55  ;;  %v1693_v0 = vpack.c.bf16 %v866_v14, %v854_v27  ;;  %v2596_v27 = vand.u32 4294901760, %v2175_v16  ;;  %v2599_v57 = vand.u32 4294901760, %v2195_v31  ;;  %v2604_v31 = vld [vmem:[#allocation25_spill] sm:$0xff] }
 0x30e   :  { %1752 = vmatprep.subr.bf16.mxu1 %v2575_v8 }
 0x30f   :  { %1682 = vmatpush1.bf16.msra.mxu0 %v1681_v45  ;;  %v883_v45 = vsub.f32 %v2220_v48, %v2558_v3  ;;  %v2577_v3 = vld [vmem:[#allocation21_spill] sm:$0xff] }
 0x310   :  { %1684 = vmatprep.subr.bf16.mxu0 %v1683_v20  ;;  %v1691_v20 = vpack.c.bf16 %v860_v56, %v848_v30  ;;  %v2579_v56 = vand.u32 4294901760, %v2100_v9  ;;  %v2584_v9 = vand.u32 4294901760, %v2110_v19  ;;  %v1994_v19 = vmov 1.0  }
 0x311   :  { %1754 = vmatpush1.bf16.msra.mxu1 %v2576_v26  ;;  %v884_v6 = vand.u32 4294901760, %v883_v45  ;;  %v2591_v45 = vand.u32 4294901760, %v2141_v51  ;;  %v2598_v51 = vand.u32 4294901760, %v2179_v18  ;;  %v2603_v18 = vld [vmem:[#allocation24_spill] sm:$0xff] }
 0x312   :  { %1756 = vmatprep.subr.bf16.mxu1 %v2239_v50  ;;  %v1769_v30 = vpack.c.bf16 %v2580_v63, %v2579_v56 }
 0x313   :  { %1686 = vmatpush1.bf16.msra.mxu0 %v1685_v28  ;;  %v1695_v21 = vpack.c.bf16 %v884_v6, %v872_v7  ;;  %v1771_v28 = vpack.c.bf16 %v2582_v4, %v2581_v2  ;;  %v1779_v38 = vpack.c.bf16 %v2592_v37, %v2591_v45 }
 0x314   :  { %1688 = vmatprep.subr.bf16.mxu0 %v1687_v35  ;;  %v1773_v35 = vpack.c.bf16 %v2585_v11, %v2584_v9 }
 0x315   :  { %1758 = vmatpush1.bf16.msra.mxu1 %v2241_v62 }
 0x316   :  { %1760 = vmatprep.subr.bf16.mxu1 %v2245_v33 }
 0x317   :  { %1690 = vmatpush1.bf16.msra.mxu0 %v1689_v60  ;;  %v2594_v60 = vand.u32 4294901760, %v2153_v59  ;;  %v1789_v59 = vpack.c.bf16 %v864_v34, %v852_v40 }
 0x318   :  { %1692 = vmatprep.subr.bf16.mxu0 %v1691_v20  ;;  %v2597_v20 = vand.u32 4294901760, %v2177_v17  ;;  %v2602_v17 = vld [vmem:[#allocation23_spill] sm:$0xff] }
 0x319   :  { %1762 = vmatpush1.bf16.msra.mxu1 %v2247_v29 }
 0x31a   :  { %1764 = vmatprep.subr.bf16.mxu1 %v2577_v3  ;;  %v1785_v7 = vpack.c.bf16 %v2598_v51, %v2597_v20 }
 0x31b   :  { %1694 = vmatpush1.bf16.msra.mxu0 %v1693_v0 }
 0x31c   :  { %1696 = vmatprep.subr.bf16.mxu0 %v1695_v21 }
 0x31d   :  { %1766 = vmatpush1.bf16.msra.mxu1 %v2578_v1 }
 0x31e   :  { %1768 = vmatprep.subr.bf16.mxu1 %v2268_v44  ;;  %v1775_v44 = vpack.c.bf16 %v2587_v13, %v2586_v12 }
 0x31f   :  { %1698 = vmatpush1.bf16.msra.mxu0 %v2266_v25  ;;  %v2588_v25 = vand.u32 4294901760, %v2134_v39 }
 0x320   :  { %1193 = vmatmul.mubr.f32.vlgmr.msra.gmra.mrb[0].mxu1 %v2583_v53  ;;  %1700 = vmatprep.subr.bf16.mxu0 %v2270_v23  ;;  %v2589_v23 = vand.u32 4294901760, %v2136_v42  ;;  %v2595_v42 = vand.u32 4294901760, %v2173_v15  ;;  %v2601_v15 = vand.u32 4294901760, %v2220_v48 }
 0x321   :  { %1770 = vmatpush1.bf16.msra.mxu1 %v1769_v30  ;;  %1359 = vmatprep.mubr.f32.mxu1 %v2571_v49 }
 0x322   :  { %1772 = vmatprep.subr.bf16.mxu1 %v1771_v28  ;;  %v1777_v61 = vpack.c.bf16 %v2589_v23, %v2588_v25  ;;  %v1783_v14 = vpack.c.bf16 %v2596_v27, %v2595_v42  ;;  %v1791_v16 = vpack.c.bf16 %v2601_v15, %v870_v22 }
 0x323   :  { %1702 = vmatpush1.bf16.msra.mxu0 %v2272_v5  ;;  %v2593_v5 = vand.u32 4294901760, %v2151_v58  ;;  %v2600_v58 = vand.u32 4294901760, %v2198_v32  ;;  %v2605_v32 = vld [vmem:[#allocation15_spill] sm:$0xff] }
 0x325   :  { %1774 = vmatpush1.bf16.msra.mxu1 %v1773_v35  ;;  %v1781_v39 = vpack.c.bf16 %v2594_v60, %v2593_v5  ;;  %v1787_v6 = vpack.c.bf16 %v2600_v58, %v2599_v57 }
 0x326   :  { %1504 = vmatmul.mubr.msk.f32.vlgmr.msra.gmra.mrb[2].mxu0 %vm581_vm5, %v1994_v19  ;;  %1776 = vmatprep.subr.bf16.mxu1 %v1775_v44 }
 0x329   :  { %1778 = vmatpush1.bf16.msra.mxu1 %v1777_v61 }
 0x32a   :  { %1780 = vmatprep.subr.bf16.mxu1 %v1779_v38 }
 0x32d   :  { %1782 = vmatpush1.bf16.msra.mxu1 %v1781_v39 }
 0x32e   :  { %1784 = vmatprep.subr.bf16.mxu1 %v1783_v14 }
 0x331   :  { %1786 = vmatpush1.bf16.msra.mxu1 %v1785_v7 }
 0x332   :  { %1788 = vmatprep.subr.bf16.mxu1 %v1787_v6 }
 0x335   :  { %1790 = vmatpush1.bf16.msra.mxu1 %v1789_v59 }
 0x336   :  { %1792 = vmatprep.subr.bf16.mxu1 %v1791_v16 }
 0x339   :  { %1794 = vmatpush1.bf16.msra.mxu1 %v2602_v17 }
 0x33a   :  { %1796 = vmatprep.subr.bf16.mxu1 %v2603_v18 }
 0x33d   :  { %1798 = vmatpush1.bf16.msra.mxu1 %v2604_v31 }
 0x33e   :  { %1800 = vmatprep.subr.bf16.mxu1 %v2605_v32 }
 0x340   :  { %1505 = vmatmul.mubr.msk.f32.vlgmr.msra.gmra.mrb[0].mxu1 %vm581_vm5, %v1994_v19 }
 0x341   :  { %1802 = vmatpush1.bf16.msra.mxu1 %v2606_v41  ;;  %1463 = vmatprep.mubr.f32.mxu1 %v2571_v49 }
 0x342   :  { %1804 = vmatprep.subr.bf16.mxu1 %v2607_v43 }
 0x345   :  { %1806 = vmatpush1.bf16.msra.mxu1 %v2127_v36 }
 0x346   :  { %1808 = vmatprep.subr.bf16.mxu1 %v2143_v52 }
 0x349   :  { %1810 = vmatpush1.bf16.msra.mxu1 %v2145_v54 }
 0x34a   :  { %1812 = vmatprep.subr.bf16.mxu1 %v2169_v10 }
 0x34d   :  { %1814 = vmatpush1.bf16.msra.mxu1 %v2574_v55 }
 0x34e   :  { %1816 = vmatprep.subr.bf16.mxu1 %v2575_v8 }
 0x351   :  { %1818 = vmatpush1.bf16.msra.mxu1 %v2576_v26 }
 0x352   :  { %1820 = vmatprep.subr.bf16.mxu1 %v2239_v50 }
 0x355   :  { %1822 = vmatpush1.bf16.msra.mxu1 %v2241_v62 }
 0x356   :  { %1824 = vmatprep.subr.bf16.mxu1 %v2245_v33 }
 0x359   :  { %1826 = vmatpush1.bf16.msra.mxu1 %v2247_v29 }
 0x35a   :  { %1828 = vmatprep.subr.bf16.mxu1 %v2577_v3 }
 0x35d   :  { %1830 = vmatpush1.bf16.msra.mxu1 %v2578_v1 }
 0x360   :  { %1506 = vmatmul.mubr.msk.f32.vlgmr.msra.gmra.mrb[0].mxu1 %vm581_vm5, %v1994_v19 }
 0x361   :  { %1943 = shalt.err (!%p1940_p0)
}
 0x362   :  { %s1944_s5 = scalar_lea.hbm %s2520_s3, 128 }
 0x363   :  { %p1945_p1 = scmp.ne.s32.totalorder %s2520_s3, %s1944_s5  ;;  %p1948_p2 = scmp.lt.u32.totalorder %s1944_s5, %s2520_s3 }
 0x365   :  { %p1950_p3 = pnand %p1948_p2, %p1945_p1 }
 0x367   :  { %1953 = shalt.err (!%p1950_p3)
}
 0x368   :  { %1482 = dma.vmem_to_hbm [thread:$0]  %s1480_s27, 128, %s2520_s3, [#allocation4]  }
 0x369   :  { %s1996_s12 = smov [#allocation9]  }
 0x36a   :  { %s1489_s13 = sshll.u32 %s1996_s12, 4  ;;  %s1490_s13 = int_to_ptr.vmem [resolvable:$true] %s1489_s13 }
 0x36b   :  { %s1954_s1 = scalar_lea.vmem %s1490_s13, 256  ;;  %p1959_p5 = scmp.lt.s32.totalorder %s1490_s13, %s1490_s13 }
 0x36c   :  { %p1955_p4 = scmp.ne.s32.totalorder %s1490_s13, %s1954_s1  ;;  %p1960_p6 = scmp.lt.s32.totalorder %s1954_s1, %s1954_s1 }
 0x36e   :  { %p1961_p7 = por %p1960_p6, %p1959_p5 }
 0x370   :  { %p1962_p8 = pnand %p1961_p7, %p1955_p4 }
 0x3f9   :  { %v951_v46 = vpop.f32.mrb[2].mxu0 }
 0x3fa   :  { %v953_v36 = vpop.f32.mrb[3].mxu0 }
 0x433   :  { %v1466_v52 = vpop.f32.mrb[0].mxu1 }
 0x434   :  { %v1831_v54 = vadd.f32 %v1466_v52, %v951_v46  ;;  %v1468_v10 = vpop.f32.mrb[1].mxu1 }
 0x435   :  { %v1832_v29 = vadd.f32 %v1468_v10, %v953_v36 }
 0x436   :  { %1471 = vst [vmem:[#allocation9] sm:$0xff] %v1831_v54 }
 0x437   :  { %1472 = vst [vmem:[#allocation9 + $0x8] sm:$0xff] %v1832_v29 }
 0x438   :  { %1965 = shalt.err (!%p1962_p8)
}
 0x439   :  { %s1966_s15 = scalar_lea.hbm %s2521_s4, 256 }
 0x43a   :  { %p1967_p9 = scmp.ne.s32.totalorder %s2521_s4, %s1966_s15  ;;  %p1970_p10 = scmp.lt.u32.totalorder %s1966_s15, %s2521_s4 }
 0x43c   :  { %p1972_p11 = pnand %p1970_p10, %p1967_p9 }
 0x43e   :  { %1975 = shalt.err (!%p1972_p11)
}
 0x43f   :  { %1492 = dma.vmem_to_hbm [thread:$0]  %s1490_s13, 256, %s2521_s4, [#allocation10]  }
 0x440   :  { %1980 = dma.done.wait [#allocation4], 128  }
 0x441   :  { %1981 = vsyncadd [#allocation4], 4294967168 }
 0x442   :  { %1982 = dma.done.wait [#allocation10], 256  }
 0x443   :  { %1983 = vsyncadd [#allocation10], 4294967040 }
 0x444   :  { %1499 = vsyncpa [#allocation3], 1 }
 0x445   :  { %1500 = vsyncpa [#allocation6], 1 }
 0x446   :  { %1501 = vsyncpa [#allocation4], 1 }
 0x447   :  { %1502 = vsyncpa [#allocation10], 1 }

</bundles_post_ra>
